<compile_context>
chip_gen: v6e
topology: v6e:2x2x1
jax: 0.10.0
libtpu: 0.0.40
codegen_flags: <defaults>
</compile_context>

<pallas_src>
import jax
import jax.numpy as jnp
from jax.experimental import pallas as pl
from jax.experimental.pallas import tpu as pltpu


def _round_up(n, m):
    return ((n + m - 1) // m) * m


def classblock_kernel(x_ref, w1_ref, shift_ref, w2_ref, b2_ref, out_ref):
    # x_ref:    [TB, Din]   bf16
    # w1_ref:   [Din, Dbn]  bf16  (BN scale folded in)
    # shift_ref:[1, Dbn]    f32   (b1*scale + beta - mean*scale)
    # w2_ref:   [Dbn, Cpad] bf16
    # b2_ref:   [1, Cpad]   f32
    # out_ref:  [TB, Cpad]  f32
    h = jnp.dot(x_ref[...], w1_ref[...], preferred_element_type=jnp.float32)
    h = h + shift_ref[...]          # Linear bias + eval-mode BatchNorm1d (folded affine), f32
    # relu=False -> no LeakyReLU ; Dropout in eval mode -> identity
    y = jnp.dot(h.astype(jnp.bfloat16), w2_ref[...],
                preferred_element_type=jnp.float32)
    out_ref[...] = (y + b2_ref[...]).astype(out_ref.dtype)


def class_block_forward(x, w1_t, b1, bn_gamma, bn_beta, bn_mean, bn_var,
                        w2_t, b2, eps=1e-5, block_b=512):
    """x: [B, input_dim] float32. Returns logits [B, class_num] float32."""
    B, input_dim = x.shape
    bottleneck, class_num = w2_t.shape

    # ---- host/XLA-side prep (exact f32 arithmetic, done once) --------------
    # Fold eval-mode BN and the first Linear bias into the first matmul:
    #   BN(x @ W1t + b1) = x @ (W1t * scale) + ((b1 - mean) * scale + beta)
    inv_std = 1.0 / jnp.sqrt(bn_var + eps)
    scale = bn_gamma * inv_std
    w1_eff = (w1_t * scale[None, :]).astype(jnp.bfloat16)
    shift = (((b1 - bn_mean) * scale + bn_beta)[None, :]).astype(jnp.float32)

    # Lane-dense output: pad class_num up to a multiple of 128, slice back later.
    cpad = _round_up(class_num, 128)
    w2_p = jnp.pad(w2_t.astype(jnp.bfloat16), ((0, 0), (0, cpad - class_num)))
    b2_p = jnp.pad(b2, (0, cpad - class_num))[None, :].astype(jnp.float32)

    x_bf16 = x.astype(jnp.bfloat16)

    # ---- batch tiling -------------------------------------------------------
    if B <= block_b:
        tb = B                     # full batch fits in one tile
    else:
        tb = block_b               # multiple of 8/128; last tile may be ragged
    grid = (pl.cdiv(B, tb),)

    # ---- VMEM budget / cost hints ------------------------------------------
    bytes_x_tile = tb * input_dim * 2
    bytes_out_tile = tb * cpad * 4
    bytes_w = input_dim * bottleneck * 2 + bottleneck * cpad * 2
    bytes_vec = bottleneck * 4 + cpad * 4
    est = (2 * (bytes_x_tile + bytes_out_tile + bytes_w + bytes_vec)
           + tb * bottleneck * 4 + tb * cpad * 4)
    vmem_limit = int(min(64 * 1024 * 1024, max(32 * 1024 * 1024, 2 * est)))

    cost = pl.CostEstimate(
        flops=2 * B * (input_dim * bottleneck + bottleneck * cpad),
        transcendentals=0,
        bytes_accessed=B * input_dim * 2 + bytes_w + bytes_vec + B * cpad * 4,
    )

    out_padded = pl.pallas_call(
        classblock_kernel,
        out_shape=jax.ShapeDtypeStruct((B, cpad), jnp.float32),
        grid=grid,
        in_specs=[
            pl.BlockSpec((tb, input_dim), lambda i: (i, 0)),         # x tile (pipelined)
            pl.BlockSpec((input_dim, bottleneck), lambda i: (0, 0)),  # W1' resident
            pl.BlockSpec((1, bottleneck), lambda i: (0, 0)),          # shift resident
            pl.BlockSpec((bottleneck, cpad), lambda i: (0, 0)),       # W2  resident
            pl.BlockSpec((1, cpad), lambda i: (0, 0)),                # b2  resident
        ],
        out_specs=pl.BlockSpec((tb, cpad), lambda i: (i, 0)),
        compiler_params=pltpu.CompilerParams(
            dimension_semantics=("parallel",),
            vmem_limit_bytes=vmem_limit,
        ),
        cost_estimate=cost,
    )(x_bf16, w1_eff, shift, w2_p, b2_p)

    return out_padded[:, :class_num]


def make_params(key, input_dim, num_bottleneck, class_num):
    k1, k2, k3 = jax.random.split(key, 3)
    # weights_init_kaiming for Linear: kaiming_normal_ mode='fan_out'
    # std = sqrt(2 / fan_out) = sqrt(2 / num_bottleneck); bias = 0
    std_w1 = (2.0 / num_bottleneck) ** 0.5
    w1 = jax.random.normal(k1, (num_bottleneck, input_dim), jnp.float32) * std_w1
    b1 = jnp.zeros((num_bottleneck,), jnp.float32)
    # BatchNorm1d: weight ~ N(1, 0.02), bias = 0; running stats (eval) mean=0, var=1
    bn_gamma = 1.0 + 0.02 * jax.random.normal(k2, (num_bottleneck,), jnp.float32)
    bn_beta = jnp.zeros((num_bottleneck,), jnp.float32)
    bn_mean = jnp.zeros((num_bottleneck,), jnp.float32)
    bn_var = jnp.ones((num_bottleneck,), jnp.float32)
    # weights_init_classifier: Linear weight ~ N(0, 0.001), bias = 0
    w2 = jax.random.normal(k3, (class_num, num_bottleneck), jnp.float32) * 0.001
    b2 = jnp.zeros((class_num,), jnp.float32)
    # store pre-transposed ([D_in, D_out]) so both matmuls are lane-dense
    return w1.T, b1, bn_gamma, bn_beta, bn_mean, bn_var, w2.T, b2


if __name__ == "__main__":
    B, input_dim, num_bottleneck, class_num = 8, 64, 128, 32

    key = jax.random.PRNGKey(0)
    kx, kp = jax.random.split(key)
    x = jax.random.normal(kx, (B, input_dim), jnp.float32)
    params = make_params(kp, input_dim, num_bottleneck, class_num)

    out = class_block_forward(x, *params)
    out = jax.block_until_ready(out)

    # plain-JAX f32 reference (kernel uses bf16 MXU operands -> looser tolerance)
    w1_t, b1, g, be, mu, var, w2_t, b2 = params
    h_ref = x @ w1_t + b1
    h_ref = g * (h_ref - mu) / jnp.sqrt(var + 1e-5) + be
    y_ref = h_ref @ w2_t + b2

    assert out.shape == (B, class_num)
    assert jnp.max(jnp.abs(out - y_ref)) < 5e-3

    print("KERNEL_OK")
</pallas_src>

<mosaic_0001>
module attributes {stable_mosaic.version = 11 : i64} {
  func.func @classblock_kernel(%arg0: i32, %arg1: memref<8x64xbf16, #tpu.memory_space<vmem>>, %arg2: memref<64x128xbf16, #tpu.memory_space<vmem>>, %arg3: memref<1x128xf32, #tpu.memory_space<vmem>>, %arg4: memref<128x128xbf16, #tpu.memory_space<vmem>>, %arg5: memref<1x128xf32, #tpu.memory_space<vmem>>, %arg6: memref<8x128xf32, #tpu.memory_space<vmem>>) attributes {dimension_semantics = [#tpu.dimension_semantics<parallel>], iteration_bounds = array<i64: 1>, scalar_prefetch = 0 : i64, scratch_operands = 0 : i64, tpu.core_type = #tpu.core_type<tc>, window_params = [{transform_indices = @transform_0, window_bounds = array<i64: 8, 64>}, {pipeline_mode = #tpu.pipeline_mode<synchronous>, transform_indices = @transform_1, window_bounds = array<i64: 64, 128>}, {pipeline_mode = #tpu.pipeline_mode<synchronous>, transform_indices = @transform_2, window_bounds = array<i64: 1, 128>}, {pipeline_mode = #tpu.pipeline_mode<synchronous>, transform_indices = @transform_3, window_bounds = array<i64: 128, 128>}, {pipeline_mode = #tpu.pipeline_mode<synchronous>, transform_indices = @transform_4, window_bounds = array<i64: 1, 128>}, {transform_indices = @transform_5, window_bounds = array<i64: 8, 128>}]} {
    %c0 = arith.constant 0 : index
    %c0_0 = arith.constant 0 : index
    %0 = vector.load %arg1[%c0, %c0_0] : memref<8x64xbf16, #tpu.memory_space<vmem>>, vector<8x64xbf16>
    %c0_1 = arith.constant 0 : index
    %c0_2 = arith.constant 0 : index
    %1 = vector.load %arg2[%c0_1, %c0_2] : memref<64x128xbf16, #tpu.memory_space<vmem>>, vector<64x128xbf16>
    %cst = arith.constant dense<0.000000e+00> : vector<8x128xf32>
    %2 = tpu.matmul %0, %1, %cst {dimension_numbers = #tpu.dot_dimension_numbers<[1], [0], [0], [1], [0, 0, 1, 1], [], []>} : vector<8x64xbf16>, vector<64x128xbf16>, vector<8x128xf32> -> vector<8x128xf32>
    %c0_3 = arith.constant 0 : index
    %c0_4 = arith.constant 0 : index
    %3 = vector.load %arg3[%c0_3, %c0_4] : memref<1x128xf32, #tpu.memory_space<vmem>>, vector<1x128xf32>
    %4 = vector.broadcast %3 : vector<1x128xf32> to vector<8x128xf32>
    %5 = arith.addf %2, %4 : vector<8x128xf32>
    %6 = arith.truncf %5 : vector<8x128xf32> to vector<8x128xbf16>
    %c0_5 = arith.constant 0 : index
    %c0_6 = arith.constant 0 : index
    %7 = vector.load %arg4[%c0_5, %c0_6] : memref<128x128xbf16, #tpu.memory_space<vmem>>, vector<128x128xbf16>
    %cst_7 = arith.constant dense<0.000000e+00> : vector<8x128xf32>
    %8 = tpu.matmul %6, %7, %cst_7 {dimension_numbers = #tpu.dot_dimension_numbers<[1], [0], [0], [1], [0, 0, 1, 1], [], []>} : vector<8x128xbf16>, vector<128x128xbf16>, vector<8x128xf32> -> vector<8x128xf32>
    %c0_8 = arith.constant 0 : index
    %c0_9 = arith.constant 0 : index
    %9 = vector.load %arg5[%c0_8, %c0_9] : memref<1x128xf32, #tpu.memory_space<vmem>>, vector<1x128xf32>
    %10 = vector.broadcast %9 : vector<1x128xf32> to vector<8x128xf32>
    %11 = arith.addf %8, %10 : vector<8x128xf32>
    %c0_10 = arith.constant 0 : index
    %c0_11 = arith.constant 0 : index
    %12 = vector.load %arg6[%c0_10, %c0_11] : memref<8x128xf32, #tpu.memory_space<vmem>>, vector<8x128xf32>
    tpu.vector_store %arg6[%c0_10, %c0_11], %11 {strides = array<i32>} : memref<8x128xf32, #tpu.memory_space<vmem>>, vector<8x128xf32>,
    return
  }
  func.func @transform_0(%arg0: i32) -> (i32, i32) {
    %c0_i32 = arith.constant 0 : i32
    %c0_i32_0 = arith.constant 0 : i32
    return %arg0, %c0_i32 : i32, i32
  }
  func.func @transform_1(%arg0: i32) -> (i32, i32) {
    %c0_i32 = arith.constant 0 : i32
    %c0_i32_0 = arith.constant 0 : i32
    %c0_i32_1 = arith.constant 0 : i32
    return %c0_i32, %c0_i32_0 : i32, i32
  }
  func.func @transform_2(%arg0: i32) -> (i32, i32) {
    %c0_i32 = arith.constant 0 : i32
    %c0_i32_0 = arith.constant 0 : i32
    %c0_i32_1 = arith.constant 0 : i32
    return %c0_i32, %c0_i32_0 : i32, i32
  }
  func.func @transform_3(%arg0: i32) -> (i32, i32) {
    %c0_i32 = arith.constant 0 : i32
    %c0_i32_0 = arith.constant 0 : i32
    %c0_i32_1 = arith.constant 0 : i32
    return %c0_i32, %c0_i32_0 : i32, i32
  }
  func.func @transform_4(%arg0: i32) -> (i32, i32) {
    %c0_i32 = arith.constant 0 : i32
    %c0_i32_0 = arith.constant 0 : i32
    %c0_i32_1 = arith.constant 0 : i32
    return %c0_i32, %c0_i32_0 : i32, i32
  }
  func.func @transform_5(%arg0: i32) -> (i32, i32) {
    %c0_i32 = arith.constant 0 : i32
    %c0_i32_0 = arith.constant 0 : i32
    return %arg0, %c0_i32 : i32, i32
  }
}

</mosaic_0001>

<bundles_post_ra>
// kernel: tpu_custom_call.1
= control target key start
LH: loop header
LB: loop body
LE: loop exit
PB: predicated region body
PF: predicated region fallthrough
CT: control target
= control target key end

     0   :  { %10 = vsyncpa [#allocation3], 0  ;;  %s497_s0 = inlined_call_operand.hbm [shape: bf16[8,64], index: 0, kind: input, shape index: {}]   ;;  %s498_s1 = inlined_call_operand.hbm [shape: bf16[64,128], index: 1, kind: input, shape index: {}]   ;;  %s499_s2 = inlined_call_operand.vmem [shape: f32[1,128], index: 2, kind: input, shape index: {}]   ;;  %s500_s3 = inlined_call_operand.hbm [shape: bf16[128,128], index: 3, kind: input, shape index: {}]   ;;  %s501_s4 = inlined_call_operand.vmem [shape: f32[1,128], index: 4, kind: input, shape index: {}]   ;;  %s502_s5 = inlined_call_operand.hbm [shape: f32[8,128], index: 5, kind: output, shape index: {}]  }
   0x1   :  { %11 = vsyncpa [#allocation6], 0 }
   0x2   :  { %12 = vsyncpa [#allocation4], 0  ;;  %s441_s18 = smov [#allocation5]  }
   0x3   :  { %s28_s19 = sshll.u32 %s441_s18, 4  ;;  %s29_s19 = int_to_ptr.vmem [resolvable:$true] %s28_s19 }
   0x4   :  { %s363_s20 = scalar_lea.vmem %s29_s19, 512  ;;  %p368_p1 = scmp.lt.s32.totalorder %s29_s19, %s29_s19 }
   0x5   :  { %p364_p0 = scmp.ne.s32.totalorder %s29_s19, %s363_s20  ;;  %p369_p2 = scmp.lt.s32.totalorder %s363_s20, %s363_s20 }
   0x7   :  { %p370_p3 = por %p369_p2, %p368_p1 }
   0x9   :  { %p371_p4 = pnand %p370_p3, %p364_p0 }
   0xb   :  { %374 = shalt.err (!%p371_p4)
}
   0xc   :  { %s442_s21 = smov 64   ;;  %s443_s22 = smov 4  }
   0xd   :  { %34 = dma.hbm_to_vmem [thread:$0]  %s498_s1, 512, %s29_s19, [#allocation6], %s442_s21, %s442_s21, %s443_s22  }
   0xe   :  { %s444_s25 = smov [#allocation2]   ;;  %s445_s27 = smov [#allocation7]  }
   0xf   :  { %s19_s26 = sshll.u32 %s444_s25, 4  ;;  %s42_s28 = sshll.u32 %s445_s27, 4  ;;  %s20_s26 = int_to_ptr.vmem [resolvable:$true] %s19_s26  ;;  %s43_s28 = int_to_ptr.vmem [resolvable:$true] %s42_s28 }
  0x10   :  { %s383_s29 = scalar_lea.vmem %s20_s26, 64  ;;  %p388_p6 = scmp.lt.s32.totalorder %s20_s26, %s20_s26 }
  0x11   :  { %p384_p5 = scmp.ne.s32.totalorder %s20_s26, %s383_s29  ;;  %p389_p7 = scmp.lt.s32.totalorder %s383_s29, %s383_s29 }
  0x13   :  { %p390_p8 = por %p389_p7, %p388_p6 }
  0x15   :  { %p391_p9 = pnand %p390_p8, %p384_p5 }
  0x17   :  { %394 = shalt.err (!%p391_p9)
}
  0x18   :  { %22 = dma.hbm_to_vmem [thread:$0]  %s497_s0, 64, %s20_s26, [#allocation3]  }
  0x19   :  { %s403_s7 = scalar_lea.vmem %s43_s28, 1024  ;;  %p408_p11 = scmp.lt.s32.totalorder %s43_s28, %s43_s28 }
  0x1a   :  { %p404_p10 = scmp.ne.s32.totalorder %s43_s28, %s403_s7  ;;  %p409_p12 = scmp.lt.s32.totalorder %s403_s7, %s403_s7 }
  0x1c   :  { %p410_p13 = por %p409_p12, %p408_p11 }
  0x1e   :  { %p411_p0 = pnand %p410_p13, %p404_p10 }
  0x20   :  { %414 = shalt.err (!%p411_p0)
}
  0x21   :  { %48 = dma.hbm_to_vmem [thread:$0]  %s500_s3, 1024, %s43_s28, [#allocation6], %s442_s21, %s442_s21, %s443_s22  }
  0x22   :  { %435 = dma.done.wait [#allocation3], 64  }
  0x23   :  { %436 = vsyncadd [#allocation3], 4294967232 }
  0x24   :  { %437 = dma.done.wait [#allocation6], 1536  }
  0x25   :  { %438 = vsyncadd [#allocation6], 4294965760  ;;  %v446_v0 = vmov 0.0   ;;  %vm447_vm0 = vmmov 0   ;;  %v343_v1 = vld [vmem:[#allocation5 + $0x18] sm:$0xff]   ;;  %v344_v2 = vld [vmem:[#allocation5 + $0x10] sm:$0xff]  }
  0x26   :  { %303 = vmatprep.subr.bf16.mxu0 %v446_v0  ;;  %311 = vmatprep.mubr.msk.bf16.mxu0 %vm447_vm0, %v446_v0  ;;  %v347_v3 = vld [vmem:[#allocation7 + $0x38] sm:$0xff]   ;;  %v345_v4 = vld [vmem:[#allocation5 + $0x8] sm:$0xff]   ;;  %v348_v5 = vld [vmem:[#allocation7 + $0x30] sm:$0xff]   ;;  %vm101_vm1 = vcmask 523264   ;;  %s448_s11 = smov [#allocation8]  }
  0x27   :  { %315 = vmatprep.subr.bf16.mxu1 %v446_v0  ;;  %331 = vmatprep.mubr.msk.bf16.mxu1 %vm447_vm0, %v446_v0  ;;  %v346_v6 = vld [vmem:[#allocation5] sm:$0xff]   ;;  %v349_v7 = vld [vmem:[#allocation7 + $0x28] sm:$0xff]   ;;  %v61_v8 = vld [vmem:[#allocation2] sm:$0xf]  ;;  %s264_s12 = sshll.u32 %s448_s11, 4  ;;  %s265_s12 = int_to_ptr.vmem [resolvable:$true] %s264_s12 }
  0x28   :  { %304 = vmatpush3.bf16.msra.mxu0 %v343_v1  ;;  %316 = vmatpush3.bf16.msra.mxu1 %v347_v3  ;;  %v350_v9 = vld [vmem:[#allocation7 + $0x20] sm:$0xff]   ;;  %v351_v10 = vld [vmem:[#allocation7 + $0x18] sm:$0xff]   ;;  %v352_v11 = vld [vmem:[#allocation7 + $0x10] sm:$0xff]   ;;  %p420_p2 = scmp.lt.s32.totalorder %s265_s12, %s265_s12 }
  0x29   :  { %305 = vmatprep.subr.bf16.mxu0 %v446_v0  ;;  %317 = vmatprep.subr.bf16.mxu1 %v446_v0  ;;  %v353_v12 = vld [vmem:[#allocation7 + $0x8] sm:$0xff]   ;;  %v354_v13 = vld [vmem:[#allocation7] sm:$0xff]   ;;  %v274_v14 = vld [vmem:[%s499_s2] ss:$0 sm:$0xff]  ;;  %s415_s2 = scalar_lea.vmem %s265_s12, 128 }
  0x2a   :  { %v280_v21 = vld [vmem:[%s501_s4] ss:$0 sm:$0xff]  ;;  %p416_p1 = scmp.ne.s32.totalorder %s265_s12, %s415_s2  ;;  %p421_p3 = scmp.lt.s32.totalorder %s415_s2, %s415_s2 }
  0x2c   :  { %306 = vmatpush3.bf16.msra.mxu0 %v344_v2  ;;  %318 = vmatpush3.bf16.msra.mxu1 %v348_v5  ;;  %p422_p4 = por %p421_p3, %p420_p2 }
  0x2d   :  { %307 = vmatprep.subr.bf16.mxu0 %v446_v0  ;;  %319 = vmatprep.subr.bf16.mxu1 %v446_v0 }
  0x2e   :  { %p423_p5 = pnand %p422_p4, %p416_p1 }
  0x30   :  { %308 = vmatpush3.bf16.msra.mxu0 %v345_v4  ;;  %320 = vmatpush3.bf16.msra.mxu1 %v349_v7 }
  0x31   :  { %309 = vmatprep.subr.bf16.mxu0 %v446_v0  ;;  %321 = vmatprep.subr.bf16.mxu1 %v446_v0 }
  0x34   :  { %310 = vmatpush3.bf16.msra.mxu0 %v346_v6  ;;  %322 = vmatpush3.bf16.msra.mxu1 %v350_v9 }
  0x35   :  { %323 = vmatprep.subr.bf16.mxu1 %v446_v0 }
  0x37   :  { %312 = vmatmul.mubr.msk.bf16.vlgmr.msra.gmra.mxu0 %vm101_vm1, %v61_v8 }
  0x38   :  { %324 = vmatpush3.bf16.msra.mxu1 %v351_v10 }
  0x39   :  { %325 = vmatprep.subr.bf16.mxu1 %v446_v0 }
  0x3c   :  { %326 = vmatpush3.bf16.msra.mxu1 %v352_v11 }
  0x3d   :  { %327 = vmatprep.subr.bf16.mxu1 %v446_v0 }
  0x40   :  { %328 = vmatpush3.bf16.msra.mxu1 %v353_v12 }
  0x41   :  { %329 = vmatprep.subr.bf16.mxu1 %v446_v0 }
  0x44   :  { %330 = vmatpush3.bf16.msra.mxu1 %v354_v13 }
  0xf7   :  { %v139_v15 = vpop.f32.mrf.mxu0 }
  0xf8   :  { %v140_v16 = vadd.f32 %v274_v14, %v139_v15 }
  0xf9   :  { %v313_v17 = vpop.f32.mrf.mxu0 }
  0xfa   :  { %v145_v18 = vpack.c.bf16 %v140_v16, %v140_v16 }
  0xfb   :  { %v142_v19 = vpop.f32.mrf.mxu0 }
  0xfc   :  { %332 = vmatmul.mubr.bf16.vlgmr.msra.gmra.mxu1 %v145_v18 }
  0xfd   :  { %v314_v20 = vpop.f32.mrf.mxu0 }
 0x1bc   :  { %v251_v22 = vpop.f32.mrf.mxu1 }
 0x1bd   :  { %v252_v23 = vadd.f32 %v280_v21, %v251_v22 }
 0x1be   :  { %v333_v24 = vpop.f32.mrf.mxu1 }
 0x1bf   :  { %257 = vst [vmem:[#allocation8] sm:$0xff] %v252_v23 }
 0x1c0   :  { %v254_v25 = vpop.f32.mrf.mxu1 }
 0x1c1   :  { %426 = shalt.err (!%p423_p5)
}
 0x1c2   :  { %267 = dma.vmem_to_hbm [thread:$0]  %s265_s12, 128, %s502_s5, [#allocation4]   ;;  %v334_v26 = vpop.f32.mrf.mxu1 }
 0x1c3   :  { %439 = dma.done.wait [#allocation4], 128  }
 0x1c4   :  { %440 = vsyncadd [#allocation4], 4294967168 }
 0x1c5   :  { %271 = vsyncpa [#allocation3], 1 }
 0x1c6   :  { %272 = vsyncpa [#allocation6], 1 }
 0x1c7   :  { %273 = vsyncpa [#allocation4], 1 }

</bundles_post_ra>
